<compile_context>
chip_gen: v5e
topology: v5e:2x2
jax: 0.10.0
libtpu: 0.0.40
codegen_flags: <defaults>
</compile_context>

<pallas_src>
import functools

import jax
import jax.numpy as jnp
from jax.experimental import pallas as pl
from jax.experimental.pallas import tpu as pltpu

LANE = 128


def _round_up(x, m):
    return (x + m - 1) // m * m


def _cdiv(a, b):
    return (a + b - 1) // b


def _vmem_capacity_bytes():
    try:
        return int(pltpu.get_tpu_info().vmem_capacity_bytes)
    except Exception:
        return 128 << 20  # v5e/v6e physical VMEM as a safe fallback


def _default_batch_tile():
    # v5e's MXU is 128x128, so TB=128 already saturates the M dimension and the
    # freed VMEM buys a wider O tile; v6e/v7x have 256-row MXUs.
    try:
        kind = jax.devices()[0].device_kind.lower()
    except Exception:
        kind = ""
    if ("v5 lite" in kind) or ("v5e" in kind) or ("v5lite" in kind):
        return 128
    return 256


def _sublane(*dtypes):
    # Native sublane tile: 8 rows for 4-byte dtypes, 16 for 2-byte, 32 for 1-byte.
    min_itemsize = min(jnp.dtype(d).itemsize for d in dtypes)
    return max(8, 32 // max(min_itemsize, 1))


# -----------------------------------------------------------------------------
# Kernels
# -----------------------------------------------------------------------------
def red_kernel_relu(x_ref, w1_ref, w2_ref, b_ref, o_ref, *,
                    redundancy, f_pad, fuse_concat):
    """use_relu=True path.

    x / w1 stay in their stored (f32) dtype; the relu multiply runs at that
    precision and only the GEMM operand is cast to the compute dtype (w2's
    dtype) right before the dot.  Accumulation is always f32.
    """
    x = x_ref[...]                                   # (TB, F_pad)
    w1 = w1_ref[...]                                 # (R,  F_pad)
    cdt = w2_ref.dtype

    if fuse_concat:
        # Shallow F (F_pad == 128): fuse into a single K = R*F_pad dot so the
        # MXU sees a deep enough contraction.
        parts = [
            jnp.maximum(x * w1[r:r + 1, :], 0.0).astype(cdt)
            for r in range(redundancy)
        ]
        y = jnp.concatenate(parts, axis=1)           # (TB, R*F_pad), lane-aligned
        acc = jnp.dot(y, w2_ref[...], preferred_element_type=jnp.float32)
    else:
        # Deep F: accumulate per-redundancy dots; avoids materializing the
        # (TB, R*F_pad) concatenated intermediate (VMEM copy / vreg pressure)
        # while each dot keeps K = F_pad >= 256.
        acc = jnp.zeros((x.shape[0], o_ref.shape[1]), jnp.float32)
        for r in range(redundancy):                  # R is small -> static unroll
            y_r = jnp.maximum(x * w1[r:r + 1, :], 0.0).astype(cdt)
            acc = acc + jnp.dot(y_r, w2_ref[r * f_pad:(r + 1) * f_pad, :],
                                preferred_element_type=jnp.float32)

    o_ref[...] = (acc + b_ref[...]).astype(o_ref.dtype)


def red_kernel_gemm(x_ref, w_ref, b_ref, o_ref):
    """use_relu=False path: weights folded in the wrapper -> plain GEMM."""
    x = x_ref[...].astype(w_ref.dtype)
    acc = jnp.dot(x, w_ref[...], preferred_element_type=jnp.float32)
    o_ref[...] = (acc + b_ref[...]).astype(o_ref.dtype)


# -----------------------------------------------------------------------------
# Parameter preparation (do ONCE at parameter-load time, not per forward)
# -----------------------------------------------------------------------------
def prepare_red_layer_params(w1, w2, bias=None, *, use_relu=True,
                             compute_dtype=None):
    """Regroup / fold / pad / cast the RedLayer weights for the Pallas kernel.

    compute_dtype: dtype of the GEMM operands (bfloat16 recommended on all
    generations for MXU rate and to halve the weight HBM bytes; the elementwise
    relu multiply and the accumulation stay f32 regardless).
    """
    R, F = w1.shape
    O, K = w2.shape
    assert K == F * R, "weight2 must have shape (out_features, in_features * redundancy)"

    F_pad = _round_up(F, LANE)
    O_pad = _round_up(O, LANE)
    cdt = jnp.dtype(compute_dtype) if compute_dtype is not None else jnp.dtype(w2.dtype)

    # Regroup: w2[o, f*R + r] -> w2rf[r, f, o]  (matches x.permute(0,2,1).reshape).
    w2rf = w2.astype(jnp.float32).reshape(O, F, R).transpose(2, 1, 0)   # (R, F, O)

    b = bias if bias is not None else jnp.zeros((O,), jnp.float32)
    b_pad = jnp.zeros((1, O_pad), jnp.float32).at[0, :O].set(b.astype(jnp.float32))

    params = dict(use_relu=use_relu, R=R, F=F, O=O, F_pad=F_pad, O_pad=O_pad,
                  bias=b_pad, compute_dtype=cdt)

    if use_relu:
        # w1 stays in its parameter dtype (f32): the relu multiply is exact.
        w1_pad = jnp.zeros((R, F_pad), w1.dtype).at[:, :F].set(w1)
        w2_pad = (jnp.zeros((R, F_pad, O_pad), jnp.float32)
                  .at[:, :F, :O].set(w2rf)
                  .reshape(R * F_pad, O_pad).astype(cdt))
        params.update(w1=w1_pad, w2=w2_pad)
    else:
        # Fold once in f32: W_eff[f, o] = sum_r w1[r, f] * w2rf[r, f, o].
        w_eff = jnp.einsum('rf,rfo->fo', w1.astype(jnp.float32), w2rf)
        w_pad = (jnp.zeros((F_pad, O_pad), jnp.float32)
                 .at[:F, :O].set(w_eff).astype(cdt))
        params.update(w2=w_pad)
    # TODO(synk): optional int8 w2 quantization (per-column scales, dequant in
    # the f32 epilogue) would be a further 2x weight-byte win on v6e only
    # (v7x MXU has no int path) — not implemented here.
    return params


# -----------------------------------------------------------------------------
# Forward
# -----------------------------------------------------------------------------
def red_layer_apply(x, params, *, batch_tile=None, out_tile_max=2048):
    """RedLayer.forward using precomputed params from prepare_red_layer_params."""
    B = x.shape[0]
    x2 = x.reshape(B, -1)
    F, F_pad = params['F'], params['F_pad']
    O, O_pad = params['O'], params['O_pad']
    cdt = params['compute_dtype']
    use_relu = params['use_relu']
    R = params['R']
    assert x2.shape[1] == F, "flattened input must have in_features columns"

    x_item = jnp.dtype(x2.dtype).itemsize
    out_item = jnp.dtype(x.dtype).itemsize
    c_item = jnp.dtype(cdt).itemsize

    # --- batch tiling (sublane-aligned for the narrowest participating dtype) --
    if batch_tile is None:
        batch_tile = _default_batch_tile()
    sub = _sublane(x2.dtype, cdt)                   # 8 f32 / 16 bf16 / 32 int8
    B_pad0 = _round_up(B, sub)
    TB = min(_round_up(max(batch_tile, sub), sub), B_pad0)

    # --- output tiling: stream w2 over O instead of holding it resident -------
    vmem_cap = _vmem_capacity_bytes()
    vmem_budget = int(vmem_cap * 0.8)               # ~51 MiB on v7x, ~102 MiB on v5e/v6e

    K_rows = R * F_pad if use_relu else F_pad       # rows of one w2 tile

    def _working_set(tn):
        # Default double-buffered blocks + in-kernel intermediates.
        ws = 2 * (TB * F_pad * x_item               # x tile
                  + K_rows * tn * c_item            # w2 tile (streamed over O)
                  + tn * 4                          # bias tile (f32)
                  + TB * tn * out_item)             # out tile
        if use_relu:
            ws += 2 * R * F_pad * jnp.dtype(params['w1'].dtype).itemsize
            ws += TB * R * F_pad * c_item           # relu'd / concatenated operand
        return ws

    out_tile_max = max(out_tile_max, LANE)
    n_lanes = O_pad // LANE
    tn_candidates = sorted(
        {LANE * d for d in range(1, n_lanes + 1)
         if n_lanes % d == 0 and LANE * d <= out_tile_max},
        reverse=True)
    TN = tn_candidates[-1]                          # smallest divisor tile as fallback
    for cand in tn_candidates:
        if _working_set(cand) + (4 << 20) <= vmem_budget:
            TN = cand
            break
    # TODO(synk): for very large R*F_pad the (K_rows, TN) weight tile itself can
    # exceed the VMEM budget; that case needs a trailing "arbitrary" K grid axis
    # with an f32 VMEM accumulator (pl.when init/finalize), not implemented here.

    # Guarantee >= 2 grid steps when possible so a v7x megacore can shard the
    # work across both TensorCores ("parallel" axes are useless on a 1-step grid).
    if (B_pad0 // TB) * (O_pad // TN) <= 1 and B_pad0 >= 2 * sub:
        TB = _round_up(_cdiv(B_pad0, 2), sub)
    B_pad = _round_up(B_pad0, TB)
    grid = (B_pad // TB, O_pad // TN)

    # --- activations: skip the pad HBM round trip when already aligned --------
    # (no dtype cast here either: the compute-dtype cast happens in-kernel).
    if B_pad == B and F_pad == F:
        x_in = x2
    else:
        x_in = jnp.zeros((B_pad, F_pad), x2.dtype).at[:B, :F].set(x2)

    if use_relu:
        kernel = functools.partial(red_kernel_relu, redundancy=R, f_pad=F_pad,
                                   fuse_concat=(F_pad == LANE))
        in_arrays = (x_in, params['w1'], params['w2'], params['bias'])
        in_specs = [
            pl.BlockSpec((TB, F_pad), lambda i, j: (i, 0)),     # x: batch-tiled, reused over j
            pl.BlockSpec((R, F_pad), lambda i, j: (0, 0)),      # w1: small, resident
            pl.BlockSpec((K_rows, TN), lambda i, j: (0, j)),    # w2: streamed over O
            pl.BlockSpec((1, TN), lambda i, j: (0, j)),         # bias
        ]
        flops = 2 * B_pad * K_rows * O_pad + 2 * B_pad * R * F_pad
    else:
        kernel = red_kernel_gemm
        in_arrays = (x_in, params['w2'], params['bias'])
        in_specs = [
            pl.BlockSpec((TB, F_pad), lambda i, j: (i, 0)),
            pl.BlockSpec((F_pad, TN), lambda i, j: (0, j)),
            pl.BlockSpec((1, TN), lambda i, j: (0, j)),
        ]
        flops = 2 * B_pad * F_pad * O_pad

    vmem_limit = int(min(max(_working_set(TN) + (4 << 20), 32 << 20), vmem_budget))
    bytes_accessed = (sum(int(a.size) * jnp.dtype(a.dtype).itemsize for a in in_arrays)
                      + B_pad * O_pad * out_item)

    out = pl.pallas_call(
        kernel,
        out_shape=jax.ShapeDtypeStruct((B_pad, O_pad), x.dtype),
        grid=grid,
        in_specs=in_specs,
        out_specs=pl.BlockSpec((TB, TN), lambda i, j: (i, j)),
        compiler_params=pltpu.CompilerParams(
            dimension_semantics=("parallel", "parallel"),
            vmem_limit_bytes=vmem_limit),
        cost_estimate=pl.CostEstimate(flops=int(flops), transcendentals=0,
                                      bytes_accessed=int(bytes_accessed)),
    )(*in_arrays)

    if B_pad == B and O_pad == O:
        return out
    return out[:B, :O]


def red_layer_forward(x, w1, w2, bias=None, *, use_relu=True, compute_dtype=None):
    """Convenience one-shot wrapper (prepares params then applies).

    For production use, call prepare_red_layer_params once and reuse the result
    so the weight regroup / fold / pad is hoisted out of the per-call path.
    """
    params = prepare_red_layer_params(w1, w2, bias, use_relu=use_relu,
                                      compute_dtype=compute_dtype)
    return red_layer_apply(x, params)


# -----------------------------------------------------------------------------
# Pure-JAX reference mirroring the PyTorch forward exactly
# -----------------------------------------------------------------------------
def red_layer_ref(x, w1, w2, bias=None, use_relu=True):
    B = x.shape[0]
    R, _ = w1.shape
    xr = jnp.repeat(x.reshape(B, 1, -1), R, axis=1)            # (B, R, F)
    y = xr * w1[None, :, :]
    if use_relu:
        y = jnp.maximum(y, 0.0)
    z = jnp.transpose(y, (0, 2, 1)).reshape(B, -1)             # (B, F*R)
    out = z @ w2.T
    if bias is not None:
        out = out + bias
    return out


if __name__ == "__main__":
    B, in_features, out_features, redundancy = 4, 32, 16, 3

    key = jax.random.PRNGKey(0)
    kx, k1, k2 = jax.random.split(key, 3)
    x = jax.random.normal(kx, (B, in_features), jnp.float32)
    # nn.init.uniform_(w, a=-0.5, b=0.5)
    w1 = jax.random.uniform(k1, (redundancy, in_features), jnp.float32, -0.5, 0.5)
    w2 = jax.random.uniform(
        k2, (out_features, in_features * redundancy), jnp.float32, -0.5, 0.5
    )
    # TODO(synk): the PyTorch __init__ bias=True branch references an undefined
    # `std2` (NameError), so bias=None is the only well-defined configuration.
    bias = None

    ref = red_layer_ref(x, w1, w2, bias, use_relu=True)

    # 1) use_relu=True path, f32 operands (strict numerical check).
    params = prepare_red_layer_params(w1, w2, bias, use_relu=True)
    out = jax.block_until_ready(red_layer_apply(x, params))
    assert out.shape == (B, out_features)
    assert jnp.allclose(out, ref, atol=1e-5, rtol=1e-5)

    # 2) use_relu=False path exercises the folded-weight single-GEMM kernel.
    params_nr = prepare_red_layer_params(w1, w2, bias, use_relu=False)
    out_nr = jax.block_until_ready(red_layer_apply(x, params_nr))
    ref_nr = red_layer_ref(x, w1, w2, bias, use_relu=False)
    assert jnp.allclose(out_nr, ref_nr, atol=1e-4, rtol=1e-4)

    # 3) bf16 GEMM-operand variant (MXU fast path on all gens): relu multiply
    #    stays f32, only the dot operands are bf16, accumulation f32.
    params_bf = prepare_red_layer_params(w1, w2, bias, use_relu=True,
                                         compute_dtype=jnp.bfloat16)
    out_bf = jax.block_until_ready(red_layer_apply(x, params_bf))
    assert jnp.allclose(out_bf, ref, atol=1e-1, rtol=1e-1)

    # 4) Slightly larger (still small) shapes exercising the per-redundancy
    #    loop-accumulate branch (F_pad >= 256), the streamed O tiling, and the
    #    padded-batch slice path.
    B2, F2, O2 = 24, 256, 384
    kx2, k12, k22 = jax.random.split(jax.random.PRNGKey(1), 3)
    xb = jax.random.normal(kx2, (B2, F2), jnp.float32)
    w1b = jax.random.uniform(k12, (redundancy, F2), jnp.float32, -0.5, 0.5)
    w2b = jax.random.uniform(k22, (O2, F2 * redundancy), jnp.float32, -0.5, 0.5)
    params2 = prepare_red_layer_params(w1b, w2b, None, use_relu=True)
    out2 = jax.block_until_ready(
        red_layer_apply(xb, params2, batch_tile=16, out_tile_max=128))
    ref2 = red_layer_ref(xb, w1b, w2b, None, use_relu=True)
    assert out2.shape == (B2, O2)
    assert jnp.allclose(out2, ref2, atol=1e-3, rtol=1e-3)

    print("KERNEL_OK")
</pallas_src>

<mosaic_0001>
module attributes {stable_mosaic.version = 11 : i64} {
  func.func @red_kernel_relu(%arg0: i32, %arg1: i32, %arg2: memref<8x128xf32, #tpu.memory_space<vmem>>, %arg3: memref<3x128xf32, #tpu.memory_space<vmem>>, %arg4: memref<384x128xf32, #tpu.memory_space<vmem>>, %arg5: memref<1x128xf32, #tpu.memory_space<vmem>>, %arg6: memref<8x128xf32, #tpu.memory_space<vmem>>) attributes {dimension_semantics = [#tpu.dimension_semantics<parallel>, #tpu.dimension_semantics<parallel>], iteration_bounds = array<i64: 1, 1>, scalar_prefetch = 0 : i64, scratch_operands = 0 : i64, tpu.core_type = #tpu.core_type<tc>, window_params = [{transform_indices = @transform_0, window_bounds = array<i64: 8, 128>}, {pipeline_mode = #tpu.pipeline_mode<synchronous>, transform_indices = @transform_1, window_bounds = array<i64: 3, 128>}, {transform_indices = @transform_2, window_bounds = array<i64: 384, 128>}, {transform_indices = @transform_3, window_bounds = array<i64: 1, 128>}, {transform_indices = @transform_4, window_bounds = array<i64: 8, 128>}]} {
    %c0 = arith.constant 0 : index
    %c0_0 = arith.constant 0 : index
    %0 = vector.load %arg2[%c0, %c0_0] : memref<8x128xf32, #tpu.memory_space<vmem>>, vector<8x128xf32>
    %c0_1 = arith.constant 0 : index
    %c0_2 = arith.constant 0 : index
    %1 = vector.load %arg3[%c0_1, %c0_2] : memref<3x128xf32, #tpu.memory_space<vmem>>, vector<3x128xf32>
    %2 = vector.extract_strided_slice %1 {offsets = [0, 0], sizes = [1, 128], strides = [1, 1]} : vector<3x128xf32> to vector<1x128xf32>
    %3 = vector.broadcast %2 : vector<1x128xf32> to vector<8x128xf32>
    %4 = arith.mulf %0, %3 : vector<8x128xf32>
    %cst = arith.constant 0.000000e+00 : f32
    %5 = vector.broadcast %cst : f32 to vector<8x128xf32>
    %6 = arith.maximumf %4, %5 : vector<8x128xf32>
    %7 = vector.extract_strided_slice %1 {offsets = [1, 0], sizes = [1, 128], strides = [1, 1]} : vector<3x128xf32> to vector<1x128xf32>
    %8 = vector.broadcast %7 : vector<1x128xf32> to vector<8x128xf32>
    %9 = arith.mulf %0, %8 : vector<8x128xf32>
    %cst_3 = arith.constant 0.000000e+00 : f32
    %10 = vector.broadcast %cst_3 : f32 to vector<8x128xf32>
    %11 = arith.maximumf %9, %10 : vector<8x128xf32>
    %12 = vector.extract_strided_slice %1 {offsets = [2, 0], sizes = [1, 128], strides = [1, 1]} : vector<3x128xf32> to vector<1x128xf32>
    %13 = vector.broadcast %12 : vector<1x128xf32> to vector<8x128xf32>
    %14 = arith.mulf %0, %13 : vector<8x128xf32>
    %cst_4 = arith.constant 0.000000e+00 : f32
    %15 = vector.broadcast %cst_4 : f32 to vector<8x128xf32>
    %16 = arith.maximumf %14, %15 : vector<8x128xf32>
    %17 = tpu.concatenate %6, %11, %16 in 1 : vector<8x128xf32>, vector<8x128xf32>, vector<8x128xf32> -> vector<8x384xf32>
    %c0_5 = arith.constant 0 : index
    %c0_6 = arith.constant 0 : index
    %18 = vector.load %arg4[%c0_5, %c0_6] : memref<384x128xf32, #tpu.memory_space<vmem>>, vector<384x128xf32>
    %cst_7 = arith.constant dense<0.000000e+00> : vector<8x128xf32>
    %19 = tpu.matmul %17, %18, %cst_7 {dimension_numbers = #tpu.dot_dimension_numbers<[1], [0], [0], [1], [0, 0, 1, 1], [], []>} : vector<8x384xf32>, vector<384x128xf32>, vector<8x128xf32> -> vector<8x128xf32>
    %c0_8 = arith.constant 0 : index
    %c0_9 = arith.constant 0 : index
    %20 = vector.load %arg5[%c0_8, %c0_9] : memref<1x128xf32, #tpu.memory_space<vmem>>, vector<1x128xf32>
    %21 = vector.broadcast %20 : vector<1x128xf32> to vector<8x128xf32>
    %22 = arith.addf %19, %21 : vector<8x128xf32>
    %c0_10 = arith.constant 0 : index
    %c0_11 = arith.constant 0 : index
    %23 = vector.load %arg6[%c0_10, %c0_11] : memref<8x128xf32, #tpu.memory_space<vmem>>, vector<8x128xf32>
    tpu.vector_store %arg6[%c0_10, %c0_11], %22 {strides = array<i32>} : memref<8x128xf32, #tpu.memory_space<vmem>>, vector<8x128xf32>,
    return
  }
  func.func @transform_0(%arg0: i32, %arg1: i32) -> (i32, i32) {
    %c0_i32 = arith.constant 0 : i32
    %c0_i32_0 = arith.constant 0 : i32
    return %arg0, %c0_i32 : i32, i32
  }
  func.func @transform_1(%arg0: i32, %arg1: i32) -> (i32, i32) {
    %c0_i32 = arith.constant 0 : i32
    %c0_i32_0 = arith.constant 0 : i32
    %c0_i32_1 = arith.constant 0 : i32
    return %c0_i32, %c0_i32_0 : i32, i32
  }
  func.func @transform_2(%arg0: i32, %arg1: i32) -> (i32, i32) {
    %c0_i32 = arith.constant 0 : i32
    %c0_i32_0 = arith.constant 0 : i32
    return %c0_i32, %arg1 : i32, i32
  }
  func.func @transform_3(%arg0: i32, %arg1: i32) -> (i32, i32) {
    %c0_i32 = arith.constant 0 : i32
    %c0_i32_0 = arith.constant 0 : i32
    return %c0_i32, %arg1 : i32, i32
  }
  func.func @transform_4(%arg0: i32, %arg1: i32) -> (i32, i32) {
    %c0_i32 = arith.constant 0 : i32
    return %arg0, %arg1 : i32, i32
  }
}

</mosaic_0001>

<bundles_post_ra>
// kernel: tpu_custom_call.1
= control target key start
LH: loop header
LB: loop body
LE: loop exit
PB: predicated region body
PF: predicated region fallthrough
CT: control target
= control target key end

     0   :  { %9 = vsyncpa [#allocation3], 0  ;;  %s358_s0 = inlined_call_operand.hbm [shape: f32[8,128], index: 0, kind: input, shape index: {}]   ;;  %s359_s1 = inlined_call_operand.hbm [shape: f32[3,128], index: 1, kind: input, shape index: {}]   ;;  %s360_s2 = inlined_call_operand.hbm [shape: f32[384,128], index: 2, kind: input, shape index: {}]   ;;  %s361_s3 = inlined_call_operand.vmem [shape: f32[1,128], index: 3, kind: input, shape index: {}]   ;;  %s362_s4 = inlined_call_operand.hbm [shape: f32[8,128], index: 4, kind: output, shape index: {}]  }
   0x1   :  { %10 = vsyncpa [#allocation6], 0  ;;  %s28_s17 = sshll.u32 %s359_s1, 4  ;;  %s29_s17 = int_to_ptr.hbm [resolvable:$true] %s28_s17 }
   0x2   :  { %11 = vsyncpa [#allocation4], 0  ;;  %s312_s18 = smov [#allocation5]   ;;  %s17_s22 = sshll.u32 %s358_s0, 4  ;;  %s18_s22 = int_to_ptr.hbm [resolvable:$true] %s17_s22 }
   0x3   :  { %s30_s19 = sshll.u32 %s312_s18, 4  ;;  %s313_s23 = smov [#allocation2]   ;;  %s31_s19 = int_to_ptr.vmem [resolvable:$true] %s30_s19 }
   0x4   :  { %33 = dma.hbm_to_vmem [thread:$0]  %s29_s17, 64, %s31_s19, [#allocation6]  }
   0x5   :  { %s19_s24 = sshll.u32 %s313_s23, 4  ;;  %s38_s27 = sshll.u32 %s360_s2, 4  ;;  %s20_s24 = int_to_ptr.vmem [resolvable:$true] %s19_s24  ;;  %s39_s27 = int_to_ptr.hbm [resolvable:$true] %s38_s27 }
   0x6   :  { %22 = dma.hbm_to_vmem [thread:$0]  %s18_s22, 128, %s20_s24, [#allocation3]  }
   0x7   :  { %s314_s1 = smov [#allocation7]   ;;  %s315_s29 = smov 128  }
   0x8   :  { %s40_s28 = sshll.u32 %s314_s1, 4  ;;  %s316_s30 = smov 8   ;;  %s41_s28 = int_to_ptr.vmem [resolvable:$true] %s40_s28 }
   0x9   :  { %46 = dma.hbm_to_vmem [thread:$0]  %s39_s27, 6144, %s41_s28, [#allocation6], %s315_s29, %s315_s29, %s316_s30  }
   0xa   :  { %306 = dma.done.wait [#allocation3], 128  }
   0xb   :  { %307 = vsyncadd [#allocation3], 4294967168 }
   0xc   :  { %308 = dma.done.wait [#allocation6], 6208  }
   0xd   :  { %309 = vsyncadd [#allocation6], 4294961088  ;;  %v119_v0 = vld [vmem:[#allocation7 + $0x178] sm:$0xff]  ;;  %v118_v2 = vld [vmem:[#allocation7 + $0x170] sm:$0xff]  ;;  %s317_s5 = smov [#allocation8]   ;;  %s192_s9 = sshll.u32 %s362_s4, 4  ;;  %s193_s9 = int_to_ptr.hbm [resolvable:$true] %s192_s9 }
   0xe   :  { %v87_v1 = vld [vmem:[#allocation7 + $0x78] sm:$0xff]  ;;  %164 = vmatpush.msra.mxu2 %v119_v0  ;;  %v86_v3 = vld [vmem:[#allocation7 + $0x70] sm:$0xff]  ;;  %v117_v5 = vld [vmem:[#allocation7 + $0x168] sm:$0xff]  ;;  %s190_s6 = sshll.u32 %s317_s5, 4  ;;  %s191_s6 = int_to_ptr.vmem [resolvable:$true] %s190_s6 }
   0xf   :  { %124 = vmatpush.msra.mxu0 %v87_v1  ;;  %v103_v4 = vld [vmem:[#allocation7 + $0xf8] sm:$0xff]  ;;  %v85_v6 = vld [vmem:[#allocation7 + $0x68] sm:$0xff]  ;;  %v102_v7 = vld [vmem:[#allocation7 + $0xf0] sm:$0xff] }
  0x10   :  { %144 = vmatpush.msra.mxu1 %v103_v4  ;;  %165 = vmatpush.msra.mxu2 %v118_v2  ;;  %v101_v8 = vld [vmem:[#allocation7 + $0xe8] sm:$0xff]  ;;  %v116_v9 = vld [vmem:[#allocation7 + $0x160] sm:$0xff]  ;;  %v115_v12 = vld [vmem:[#allocation7 + $0x158] sm:$0xff] }
  0x11   :  { %125 = vmatpush.msra.mxu0 %v86_v3  ;;  %v84_v10 = vld [vmem:[#allocation7 + $0x60] sm:$0xff]  ;;  %v83_v13 = vld [vmem:[#allocation7 + $0x58] sm:$0xff]  ;;  %v114_v15 = vld [vmem:[#allocation7 + $0x150] sm:$0xff] }
  0x12   :  { %145 = vmatpush.msra.mxu1 %v102_v7  ;;  %166 = vmatpush.msra.mxu2 %v117_v5  ;;  %v100_v11 = vld [vmem:[#allocation7 + $0xe0] sm:$0xff]  ;;  %v99_v14 = vld [vmem:[#allocation7 + $0xd8] sm:$0xff]  ;;  %v82_v16 = vld [vmem:[#allocation7 + $0x50] sm:$0xff] }
  0x13   :  { %126 = vmatpush.msra.mxu0 %v85_v6  ;;  %v98_v17 = vld [vmem:[#allocation7 + $0xd0] sm:$0xff]  ;;  %v113_v18 = vld [vmem:[#allocation7 + $0x148] sm:$0xff]  ;;  %v112_v21 = vld [vmem:[#allocation7 + $0x140] sm:$0xff] }
  0x14   :  { %146 = vmatpush.msra.mxu1 %v101_v8  ;;  %167 = vmatpush.msra.mxu2 %v116_v9  ;;  %v81_v19 = vld [vmem:[#allocation7 + $0x48] sm:$0xff]  ;;  %v80_v22 = vld [vmem:[#allocation7 + $0x40] sm:$0xff]  ;;  %v111_v24 = vld [vmem:[#allocation7 + $0x138] sm:$0xff] }
  0x15   :  { %127 = vmatpush.msra.mxu0 %v84_v10  ;;  %v97_v20 = vld [vmem:[#allocation7 + $0xc8] sm:$0xff]  ;;  %v96_v23 = vld [vmem:[#allocation7 + $0xc0] sm:$0xff]  ;;  %v79_v25 = vld [vmem:[#allocation7 + $0x38] sm:$0xff] }
  0x16   :  { %147 = vmatpush.msra.mxu1 %v100_v11  ;;  %168 = vmatpush.msra.mxu2 %v115_v12  ;;  %v95_v26 = vld [vmem:[#allocation7 + $0xb8] sm:$0xff]  ;;  %v110_v27 = vld [vmem:[#allocation7 + $0x130] sm:$0xff]  ;;  %v109_v31 = vld [vmem:[#allocation7 + $0x128] sm:$0xff] }
  0x17   :  { %128 = vmatpush.msra.mxu0 %v83_v13  ;;  %v78_v28 = vld [vmem:[#allocation7 + $0x30] sm:$0xff]  ;;  %v62_v30 = vld [vmem:[#allocation5] sm:$0x7]  ;;  %v77_v32 = vld [vmem:[#allocation7 + $0x28] sm:$0xff] }
  0x18   :  { %148 = vmatpush.msra.mxu1 %v99_v14  ;;  %169 = vmatpush.msra.mxu2 %v114_v15  ;;  %v94_v29 = vld [vmem:[#allocation7 + $0xb0] sm:$0xff]  ;;  %v93_v33 = vld [vmem:[#allocation7 + $0xa8] sm:$0xff]  ;;  %v108_v34 = vld [vmem:[#allocation7 + $0x120] sm:$0xff]  ;;  %v69_v36 = vperm.slane %v62_v30, 2  ;;  %v63_v37 = vperm.slane %v62_v30, 0  ;;  %v66_v42 = vperm.slane %v62_v30, 1 }
  0x19   :  { %129 = vmatpush.msra.mxu0 %v82_v16  ;;  %v76_v35 = vld [vmem:[#allocation7 + $0x20] sm:$0xff]  ;;  %v61_v39 = vld [vmem:[#allocation2] sm:$0xff]  ;;  %v105_v49 = vld [vmem:[#allocation7 + $0x108] sm:$0xff] }
  0x1a   :  { %149 = vmatpush.msra.mxu1 %v98_v17  ;;  %170 = vmatpush.msra.mxu2 %v113_v18  ;;  %v92_v38 = vld [vmem:[#allocation7 + $0xa0] sm:$0xff]  ;;  %v107_v40 = vld [vmem:[#allocation7 + $0x118] sm:$0xff]  ;;  %v106_v44 = vld [vmem:[#allocation7 + $0x110] sm:$0xff]  ;;  %v70_v46 = vmul.f32 %v69_v36, %v61_v39  ;;  %v64_v47 = vmul.f32 %v63_v37, %v61_v39  ;;  %v67_v51 = vmul.f32 %v66_v42, %v61_v39 }
  0x1b   :  { %130 = vmatpush.msra.mxu0 %v81_v19  ;;  %v75_v41 = vld [vmem:[#allocation7 + $0x18] sm:$0xff]  ;;  %v74_v45 = vld [vmem:[#allocation7 + $0x10] sm:$0xff]  ;;  %v73_v50 = vld [vmem:[#allocation7 + $0x8] sm:$0xff] }
  0x1c   :  { %150 = vmatpush.msra.mxu1 %v97_v20  ;;  %171 = vmatpush.msra.mxu2 %v112_v21  ;;  %v91_v43 = vld [vmem:[#allocation7 + $0x98] sm:$0xff]  ;;  %v90_v48 = vld [vmem:[#allocation7 + $0x90] sm:$0xff]  ;;  %v89_v52 = vld [vmem:[#allocation7 + $0x88] sm:$0xff]  ;;  %v71_v54 = vmax.f32 %v70_v46, 0.0  ;;  %v65_v56 = vmax.f32 %v64_v47, 0.0  ;;  %v68_v58 = vmax.f32 %v67_v51, 0.0 }
  0x1d   :  { %131 = vmatpush.msra.mxu0 %v80_v22  ;;  %v104_v53 = vld [vmem:[#allocation7 + $0x100] sm:$0xff]  ;;  %v209_v59 = vld [vmem:[%s361_s3] ss:$0 sm:$0xff] }
  0x1e   :  { %151 = vmatpush.msra.mxu1 %v96_v23  ;;  %172 = vmatpush.msra.mxu2 %v111_v24  ;;  %v72_v55 = vld [vmem:[#allocation7] sm:$0xff] }
  0x1f   :  { %132 = vmatpush.msra.mxu0 %v79_v25  ;;  %v88_v57 = vld [vmem:[#allocation7 + $0x80] sm:$0xff] }
  0x20   :  { %152 = vmatpush.msra.mxu1 %v95_v26  ;;  %173 = vmatpush.msra.mxu2 %v110_v27 }
  0x21   :  { %133 = vmatpush.msra.mxu0 %v78_v28 }
  0x22   :  { %153 = vmatpush.msra.mxu1 %v94_v29  ;;  %174 = vmatpush.msra.mxu2 %v109_v31 }
  0x23   :  { %134 = vmatpush.msra.mxu0 %v77_v32 }
  0x24   :  { %154 = vmatpush.msra.mxu1 %v93_v33  ;;  %175 = vmatpush.msra.mxu2 %v108_v34 }
  0x25   :  { %135 = vmatpush.msra.mxu0 %v76_v35 }
  0x26   :  { %155 = vmatpush.msra.mxu1 %v92_v38  ;;  %176 = vmatpush.msra.mxu2 %v107_v40 }
  0x27   :  { %136 = vmatpush.msra.mxu0 %v75_v41 }
  0x28   :  { %156 = vmatpush.msra.mxu1 %v91_v43  ;;  %177 = vmatpush.msra.mxu2 %v106_v44 }
  0x29   :  { %137 = vmatpush.msra.mxu0 %v74_v45 }
  0x2a   :  { %157 = vmatpush.msra.mxu1 %v90_v48  ;;  %178 = vmatpush.msra.mxu2 %v105_v49 }
  0x2b   :  { %138 = vmatpush.msra.mxu0 %v73_v50 }
  0x2c   :  { %158 = vmatpush.msra.mxu1 %v89_v52  ;;  %179 = vmatpush.msra.mxu2 %v104_v53 }
  0x2d   :  { %139 = vmatpush.msra.mxu0 %v72_v55  ;;  %180 = vmatmul.f32.vlgmr.msra.gmra.mxu2 %v71_v54 }
  0x2e   :  { %140 = vmatmul.f32.vlgmr.msra.gmra.mxu0 %v65_v56  ;;  %159 = vmatpush.msra.mxu1 %v88_v57 }
  0x2f   :  { %160 = vmatmul.f32.vlgmr.msra.gmra.mxu1 %v68_v58 }
  0xab   :  { %v141_v60 = vpop.f32.mrf.mxu0 }
  0xac   :  { %v142_v61 = vadd.f32 %v209_v59, %v141_v60  ;;  %v161_v62 = vpop.f32.mrf.mxu1 }
  0xae   :  { %v162_v63 = vadd.f32 %v161_v62, %v142_v61 }
  0xb0   :  { %v181_v0 = vpop.f32.mrf.mxu2 }
  0xb1   :  { %v182_v1 = vadd.f32 %v181_v0, %v162_v63 }
  0xb3   :  { %184 = vst [vmem:[#allocation8] sm:$0xff] %v182_v1 }
  0xb4   :  { %195 = dma.vmem_to_hbm [thread:$0]  %s191_s6, 128, %s193_s9, [#allocation4]  }
  0xb5   :  { %310 = dma.done.wait [#allocation4], 128  }
  0xb6   :  { %311 = vsyncadd [#allocation4], 4294967168 }
  0xb7   :  { %200 = vsyncpa [#allocation3], 1 }
  0xb8   :  { %201 = vsyncpa [#allocation6], 1 }
  0xb9   :  { %202 = vsyncpa [#allocation4], 1 }

</bundles_post_ra>
